<compile_context>
chip_gen: v7x
topology: tpu7x:2x2x1
jax: 0.10.0
libtpu: 0.0.40
codegen_flags: <defaults>
</compile_context>

<pallas_src>
import functools

import numpy as np
import jax
import jax.numpy as jnp
from jax import lax
from jax.experimental import pallas as pl
from jax.experimental.pallas import tpu as pltpu


def _initial_block_kernel(Wo, xp_ref, halo_ref, w_ref, b_ref, alpha_ref, out_ref):
    # xp_ref   : (1, 2, 2, Cin, S)   phase-split input tile, S = TH*Wo
    #            xp[., a, b, ci, i*Wo+j] == x[ci, 2*(i0+i)+a, 2*j+b]
    # halo_ref : (1, 1, 2, Cin, HS)  phase-1 rows ending at this tile's row i0-1
    # w_ref    : (Cconv, 9*Cin)      BN-folded weights, K order = (kh, kw, ci)
    # b_ref    : (Cconv, 1)          BN-folded bias
    # alpha_ref: (1,) in SMEM        shared PReLU slope
    # out_ref  : (1, Cout, S)        channel-first, lane-dense output tile
    Cin = xp_ref.shape[3]
    S = xp_ref.shape[4]
    HS = halo_ref.shape[4]
    Cconv = w_ref.shape[0]
    t = pl.program_id(1)

    # Phase slabs (Cin, S): P[a][b][., i*Wo+j] = x[., 2i+a, 2j+b]  (tile-local i)
    P00 = xp_ref[0, 0, 0, :, :]
    P01 = xp_ref[0, 0, 1, :, :]
    P10 = xp_ref[0, 1, 0, :, :]
    P11 = xp_ref[0, 1, 1, :, :]

    # Row i0-1 of the phase-1 rows (zero-padding for the first row tile).
    have_halo = t > 0
    h10 = jnp.where(have_halo, halo_ref[0, 0, 0, :, HS - Wo:], 0.0)   # (Cin, Wo)
    h11 = jnp.where(have_halo, halo_ref[0, 0, 1, :, HS - Wo:], 0.0)

    def shift_down_row(p, halo_row):
        # result[., i*Wo+j] = p[., (i-1)*Wo+j];  row -1 comes from the halo.
        return jnp.concatenate([halo_row, p[:, :S - Wo]], axis=1)

    lane = lax.broadcasted_iota(jnp.int32, (Cin, S), 1)
    is_first_col = (lane % Wo) == 0
    zcol = jnp.zeros((Cin, 1), jnp.float32)

    def shift_right_col(p):
        # result[., i*Wo+j] = p[., i*Wo+j-1];  column -1 is zero padding.
        shifted = jnp.concatenate([zcol, p[:, :S - 1]], axis=1)
        return jnp.where(is_first_col, 0.0, shifted)

    # 3x3 / stride-2 / pad-1 conv taps in phase coordinates:
    #   kh=0 -> phase row 1, row index i-1 ; kh=1 -> row phase 0 ; kh=2 -> phase 1
    #   (same for kw / columns).
    r10 = shift_down_row(P10, h10)          # rows 2i-1, cols 2j
    r11 = shift_down_row(P11, h11)          # rows 2i-1, cols 2j+1
    taps = [
        shift_right_col(r11),               # (kh=0, kw=0)
        r10,                                # (kh=0, kw=1)
        r11,                                # (kh=0, kw=2)
        shift_right_col(P01),               # (kh=1, kw=0)
        P00,                                # (kh=1, kw=1)
        P01,                                # (kh=1, kw=2)
        shift_right_col(P11),               # (kh=2, kw=0)
        P10,                                # (kh=2, kw=1)
        P11,                                # (kh=2, kw=2)
    ]
    patches = jnp.concatenate(taps, axis=0)                     # (9*Cin, S)

    # Weight-stationary single matmul: (Cconv, 9*Cin) x (9*Cin, S) -> (Cconv, S)
    left = jnp.dot(w_ref[...], patches,
                   preferred_element_type=jnp.float32) + b_ref[...]

    # 2x2 / stride-2 maxpool on the unpadded input: max of the four phases.
    right = jnp.maximum(jnp.maximum(P00, P01), jnp.maximum(P10, P11))  # (Cin, S)

    # PReLU (single shared slope); store the two branches into disjoint
    # channel slices of the lane-dense, channel-first output (no concat).
    alpha = alpha_ref[0]
    out_ref[0, :Cconv, :] = jnp.where(left > 0, left, alpha * left).astype(out_ref.dtype)
    out_ref[0, Cconv:, :] = jnp.where(right > 0, right, alpha * right).astype(out_ref.dtype)


def _pick_row_tile(Ho, Wo, max_lanes=4096):
    """Largest row tile TH | Ho with TH*Wo a multiple of 128 and <= max_lanes."""
    if Wo > 128 and Wo % 128 != 0:
        return Ho                      # fall back to one tile per image
    best = None
    for th in range(1, Ho + 1):
        if Ho % th:
            continue
        s = th * Wo
        if s % 128 or s > max_lanes:
            continue
        best = th
    return best if best is not None else Ho


def initial_block(x_nchw, conv_w, bn_gamma, bn_beta, bn_mean, bn_var,
                  prelu_alpha, eps=1e-5, row_tile=None):
    """x_nchw: (N, Cin, H, W); conv_w: (Cconv, Cin, 3, 3) PyTorch OIHW."""
    N, Cin, H, W = x_nchw.shape
    Cconv = conv_w.shape[0]
    Cout = Cconv + Cin
    assert H % 2 == 0 and W % 2 == 0, "even spatial dims assumed"
    Ho, Wo = H // 2, W // 2

    TH = row_tile if row_tile is not None else _pick_row_tile(Ho, Wo)
    assert Ho % TH == 0, "row tile must divide Ho"
    S_tile = TH * Wo
    assert S_tile % 128 == 0 or TH == Ho, \
        "row tile must give a lane dim that is a multiple of 128 (or full image)"
    # Halo block width along the flattened spatial axis (holds input row 2*i0-1).
    if Wo % 128 == 0:
        HS = Wo
    elif Wo < 128 and S_tile % 128 == 0:
        HS = 128
    else:
        HS = S_tile
    halo_k = S_tile // HS
    n_tiles = Ho // TH

    # --- the single remaining glue op: fused space-to-depth (one XLA copy) ---
    # xph[n, a, b, ci, i*Wo + j] == x[n, ci, 2i+a, 2j+b]
    xph = (x_nchw.astype(jnp.float32)
           .reshape(N, Cin, Ho, 2, Wo, 2)
           .transpose(0, 3, 5, 1, 2, 4)
           .reshape(N, 2, 2, Cin, Ho * Wo))

    # Fold inference-mode BatchNorm into the conv weights + bias (tiny tensors).
    scale = (bn_gamma / jnp.sqrt(bn_var + eps)).astype(jnp.float32)
    w2d = (conv_w.astype(jnp.float32) * scale[:, None, None, None]) \
        .transpose(0, 2, 3, 1).reshape(Cconv, 9 * Cin)          # K order (kh,kw,ci)
    bias = (bn_beta - bn_mean * scale).astype(jnp.float32).reshape(Cconv, 1)
    alpha = jnp.asarray(prelu_alpha, jnp.float32).reshape((1,))

    kernel = functools.partial(_initial_block_kernel, Wo)
    out = pl.pallas_call(
        kernel,
        out_shape=jax.ShapeDtypeStruct((N, Cout, Ho * Wo), jnp.float32),
        grid=(N, n_tiles),
        in_specs=[
            # main phase-split tile
            pl.BlockSpec((1, 2, 2, Cin, S_tile),
                         lambda n, t: (n, 0, 0, 0, t)),
            # halo: phase-1 rows of the previous tile (clamped to 0 for t == 0)
            pl.BlockSpec((1, 1, 2, Cin, HS),
                         lambda n, t: (n, 1, 0, 0,
                                       jnp.maximum(t * halo_k - 1, 0))),
            pl.BlockSpec((Cconv, 9 * Cin), lambda n, t: (0, 0)),
            pl.BlockSpec((Cconv, 1), lambda n, t: (0, 0)),
            pl.BlockSpec(memory_space=pltpu.MemorySpace.SMEM),
        ],
        out_specs=pl.BlockSpec((1, Cout, S_tile), lambda n, t: (n, 0, t)),
        compiler_params=pltpu.CompilerParams(
            dimension_semantics=("parallel", "parallel")),
    )(xph, xph, w2d, bias, alpha)

    # Free metadata reshape back to NCHW (no transpose / HBM pass).
    return out.reshape(N, Cout, Ho, Wo)


def _reference(x, conv_w, gamma, beta, mean, var, alpha, eps=1e-5):
    left = lax.conv_general_dilated(
        x, conv_w, window_strides=(2, 2), padding=((1, 1), (1, 1)),
        dimension_numbers=("NCHW", "OIHW", "NCHW"))
    scale = gamma / jnp.sqrt(var + eps)
    left = left * scale[None, :, None, None] \
        + (beta - mean * scale)[None, :, None, None]
    right = lax.reduce_window(x, -jnp.inf, lax.max,
                              (1, 1, 2, 2), (1, 1, 2, 2), "VALID")
    y = jnp.concatenate([left, right], axis=1)
    return jnp.where(y > 0, y, alpha * y)


if __name__ == "__main__":
    N, Cin, H, W = 2, 4, 32, 32
    Cout = 16                      # out_channels > in_channels (ENet: 16)
    Cconv = Cout - Cin             # conv branch channels = 12

    key = jax.random.PRNGKey(0)
    kx, kw = jax.random.split(key)
    x = jax.random.normal(kx, (N, Cin, H, W), jnp.float32)

    conv_w = 0.1 * jax.random.normal(kw, (Cconv, Cin, 3, 3), jnp.float32)
    bn_gamma = 1.0 + 0.05 * jnp.arange(Cconv, dtype=jnp.float32)
    bn_beta = 0.02 * jnp.arange(Cconv, dtype=jnp.float32)
    bn_mean = 0.01 * jnp.arange(Cconv, dtype=jnp.float32)
    bn_var = 1.0 + 0.03 * jnp.arange(Cconv, dtype=jnp.float32)
    prelu_alpha = 0.25             # nn.PReLU() default

    ref = _reference(x, conv_w, bn_gamma, bn_beta, bn_mean, bn_var, prelu_alpha)

    # row_tile=8 -> 2 row tiles per image (exercises the halo path);
    # row_tile=None -> auto-picked tile (single tile for this small image).
    for rt in (8, None):
        out = initial_block(x, conv_w, bn_gamma, bn_beta, bn_mean, bn_var,
                            prelu_alpha, row_tile=rt)
        out = jax.block_until_ready(out)
        np.testing.assert_allclose(np.asarray(out), np.asarray(ref),
                                   rtol=1e-4, atol=1e-4)
        assert out.shape == (N, Cout, H // 2, W // 2)

    print("KERNEL_OK")
</pallas_src>

<mosaic_0001>
module attributes {stable_mosaic.version = 11 : i64} {
  func.func @_initial_block_kernel(%arg0: i32, %arg1: i32, %arg2: memref<1x2x2x4x128xf32, #tpu.memory_space<vmem>>, %arg3: memref<1x1x2x4x128xf32, #tpu.memory_space<vmem>>, %arg4: memref<12x36xf32, #tpu.memory_space<vmem>>, %arg5: memref<12x1xf32, #tpu.memory_space<vmem>>, %arg6: memref<1xf32, #tpu.memory_space<smem>>, %arg7: memref<1x16x128xf32, #tpu.memory_space<vmem>>) attributes {dimension_semantics = [#tpu.dimension_semantics<parallel>, #tpu.dimension_semantics<parallel>], iteration_bounds = array<i64: 2, 2>, scalar_prefetch = 0 : i64, scratch_operands = 0 : i64, tpu.core_type = #tpu.core_type<tc>, window_params = [{transform_indices = @transform_0, window_bounds = array<i64: 1, 2, 2, 4, 128>}, {transform_indices = @transform_1, window_bounds = array<i64: 1, 1, 2, 4, 128>}, {pipeline_mode = #tpu.pipeline_mode<synchronous>, transform_indices = @transform_2, window_bounds = array<i64: 12, 36>}, {pipeline_mode = #tpu.pipeline_mode<synchronous>, transform_indices = @transform_3, window_bounds = array<i64: 12, 1>}, {transform_indices = @transform_4, window_bounds = array<i64: 1>}, {transform_indices = @transform_5, window_bounds = array<i64: 1, 16, 128>}]} {
    %c0 = arith.constant 0 : index
    %c0_0 = arith.constant 0 : index
    %c0_1 = arith.constant 0 : index
    %c0_2 = arith.constant 0 : index
    %c0_3 = arith.constant 0 : index
    %0 = vector.load %arg2[%c0, %c0_0, %c0_1, %c0_2, %c0_3] : memref<1x2x2x4x128xf32, #tpu.memory_space<vmem>>, vector<1x1x1x4x128xf32>
    %1 = vector.shape_cast %0 : vector<1x1x1x4x128xf32> to vector<4x128xf32>
    %c0_4 = arith.constant 0 : index
    %c0_5 = arith.constant 0 : index
    %c1 = arith.constant 1 : index
    %c0_6 = arith.constant 0 : index
    %c0_7 = arith.constant 0 : index
    %2 = vector.load %arg2[%c0_4, %c0_5, %c1, %c0_6, %c0_7] : memref<1x2x2x4x128xf32, #tpu.memory_space<vmem>>, vector<1x1x1x4x128xf32>
    %3 = vector.shape_cast %2 : vector<1x1x1x4x128xf32> to vector<4x128xf32>
    %c0_8 = arith.constant 0 : index
    %c1_9 = arith.constant 1 : index
    %c0_10 = arith.constant 0 : index
    %c0_11 = arith.constant 0 : index
    %c0_12 = arith.constant 0 : index
    %4 = vector.load %arg2[%c0_8, %c1_9, %c0_10, %c0_11, %c0_12] : memref<1x2x2x4x128xf32, #tpu.memory_space<vmem>>, vector<1x1x1x4x128xf32>
    %5 = vector.shape_cast %4 : vector<1x1x1x4x128xf32> to vector<4x128xf32>
    %c0_13 = arith.constant 0 : index
    %c1_14 = arith.constant 1 : index
    %c1_15 = arith.constant 1 : index
    %c0_16 = arith.constant 0 : index
    %c0_17 = arith.constant 0 : index
    %6 = vector.load %arg2[%c0_13, %c1_14, %c1_15, %c0_16, %c0_17] : memref<1x2x2x4x128xf32, #tpu.memory_space<vmem>>, vector<1x1x1x4x128xf32>
    %7 = vector.shape_cast %6 : vector<1x1x1x4x128xf32> to vector<4x128xf32>
    %c0_i32 = arith.constant 0 : i32
    %8 = arith.cmpi sgt, %arg1, %c0_i32 : i32
    %c0_18 = arith.constant 0 : index
    %c0_19 = arith.constant 0 : index
    %c0_20 = arith.constant 0 : index
    %c0_21 = arith.constant 0 : index
    %c112 = arith.constant 112 : index
    %9 = vector.load %arg3[%c0_18, %c0_19, %c0_20, %c0_21, %c112] : memref<1x1x2x4x128xf32, #tpu.memory_space<vmem>>, vector<1x1x1x4x16xf32>
    %10 = vector.shape_cast %9 : vector<1x1x1x4x16xf32> to vector<4x16xf32>
    %cst = arith.constant 0.000000e+00 : f32
    %11 = vector.broadcast %cst : f32 to vector<4x16xf32>
    %12 = arith.select %8, %10, %11 : vector<4x16xf32>
    %c0_22 = arith.constant 0 : index
    %c0_23 = arith.constant 0 : index
    %c1_24 = arith.constant 1 : index
    %c0_25 = arith.constant 0 : index
    %c112_26 = arith.constant 112 : index
    %13 = vector.load %arg3[%c0_22, %c0_23, %c1_24, %c0_25, %c112_26] : memref<1x1x2x4x128xf32, #tpu.memory_space<vmem>>, vector<1x1x1x4x16xf32>
    %14 = vector.shape_cast %13 : vector<1x1x1x4x16xf32> to vector<4x16xf32>
    %cst_27 = arith.constant 0.000000e+00 : f32
    %15 = vector.broadcast %cst_27 : f32 to vector<4x16xf32>
    %16 = arith.select %8, %14, %15 : vector<4x16xf32>
    %17 = tpu.iota {dimensions = array<i32: 1>} : vector<4x128xi32>
    %c16_i32 = arith.constant 16 : i32
    %c0_i32_28 = arith.constant 0 : i32
    %18 = arith.cmpi eq, %c16_i32, %c0_i32_28 : i32
    %c1_i32 = arith.constant 1 : i32
    %19 = arith.select %18, %c1_i32, %c16_i32 : i32
    %20 = vector.broadcast %19 : i32 to vector<4x128xi32>
    %21 = arith.remsi %17, %20 : vector<4x128xi32>
    %c0_i32_29 = arith.constant 0 : i32
    %22 = vector.broadcast %c0_i32_29 : i32 to vector<4x128xi32>
    %23 = arith.cmpi ne, %21, %22 : vector<4x128xi32>
    %c0_i32_30 = arith.constant 0 : i32
    %24 = vector.broadcast %c0_i32_30 : i32 to vector<4x128xi32>
    %25 = arith.cmpi slt, %21, %24 : vector<4x128xi32>
    %c0_i32_31 = arith.constant 0 : i32
    %26 = arith.cmpi slt, %19, %c0_i32_31 : i32
    %27 = vector.broadcast %26 : i1 to vector<4x128xi1>
    %28 = vector.broadcast %27 : vector<4x128xi1> to vector<4x128xi1>
    %29 = arith.xori %25, %28 : vector<4x128xi1>
    %30 = arith.andi %29, %23 : vector<4x128xi1>
    %31 = vector.broadcast %19 : i32 to vector<4x128xi32>
    %32 = arith.addi %21, %31 : vector<4x128xi32>
    %33 = arith.select %30, %32, %21 : vector<4x128xi1>, vector<4x128xi32>
    %c0_i32_32 = arith.constant 0 : i32
    %34 = vector.broadcast %c0_i32_32 : i32 to vector<4x128xi32>
    %35 = arith.cmpi eq, %33, %34 : vector<4x128xi32>
    %cst_33 = arith.constant 0.000000e+00 : f32
    %36 = vector.broadcast %cst_33 : f32 to vector<4x1xf32>
    %37 = vector.extract_strided_slice %5 {offsets = [0, 0], sizes = [4, 112], strides = [1, 1]} : vector<4x128xf32> to vector<4x112xf32>
    %38 = tpu.concatenate %12, %37 in 1 : vector<4x16xf32>, vector<4x112xf32> -> vector<4x128xf32>
    %39 = vector.extract_strided_slice %7 {offsets = [0, 0], sizes = [4, 112], strides = [1, 1]} : vector<4x128xf32> to vector<4x112xf32>
    %40 = tpu.concatenate %16, %39 in 1 : vector<4x16xf32>, vector<4x112xf32> -> vector<4x128xf32>
    %41 = vector.extract_strided_slice %40 {offsets = [0, 0], sizes = [4, 127], strides = [1, 1]} : vector<4x128xf32> to vector<4x127xf32>
    %42 = tpu.concatenate %36, %41 in 1 : vector<4x1xf32>, vector<4x127xf32> -> vector<4x128xf32>
    %cst_34 = arith.constant 0.000000e+00 : f32
    %43 = vector.broadcast %cst_34 : f32 to vector<4x128xf32>
    %44 = arith.select %35, %43, %42 : vector<4x128xi1>, vector<4x128xf32>
    %45 = vector.extract_strided_slice %3 {offsets = [0, 0], sizes = [4, 127], strides = [1, 1]} : vector<4x128xf32> to vector<4x127xf32>
    %46 = tpu.concatenate %36, %45 in 1 : vector<4x1xf32>, vector<4x127xf32> -> vector<4x128xf32>
    %cst_35 = arith.constant 0.000000e+00 : f32
    %47 = vector.broadcast %cst_35 : f32 to vector<4x128xf32>
    %48 = arith.select %35, %47, %46 : vector<4x128xi1>, vector<4x128xf32>
    %49 = vector.extract_strided_slice %7 {offsets = [0, 0], sizes = [4, 127], strides = [1, 1]} : vector<4x128xf32> to vector<4x127xf32>
    %50 = tpu.concatenate %36, %49 in 1 : vector<4x1xf32>, vector<4x127xf32> -> vector<4x128xf32>
    %cst_36 = arith.constant 0.000000e+00 : f32
    %51 = vector.broadcast %cst_36 : f32 to vector<4x128xf32>
    %52 = arith.select %35, %51, %50 : vector<4x128xi1>, vector<4x128xf32>
    %53 = tpu.concatenate %44, %38, %40, %48, %1, %3, %52, %5, %7 in 0 : vector<4x128xf32>, vector<4x128xf32>, vector<4x128xf32>, vector<4x128xf32>, vector<4x128xf32>, vector<4x128xf32>, vector<4x128xf32>, vector<4x128xf32>, vector<4x128xf32> -> vector<36x128xf32>
    %c0_37 = arith.constant 0 : index
    %c0_38 = arith.constant 0 : index
    %54 = vector.load %arg4[%c0_37, %c0_38] : memref<12x36xf32, #tpu.memory_space<vmem>>, vector<12x36xf32>
    %cst_39 = arith.constant dense<0.000000e+00> : vector<12x128xf32>
    %55 = tpu.matmul %54, %53, %cst_39 {dimension_numbers = #tpu.dot_dimension_numbers<[1], [0], [0], [1], [0, 0, 1, 1], [], []>} : vector<12x36xf32>, vector<36x128xf32>, vector<12x128xf32> -> vector<12x128xf32>
    %c0_40 = arith.constant 0 : index
    %c0_41 = arith.constant 0 : index
    %56 = vector.load %arg5[%c0_40, %c0_41] : memref<12x1xf32, #tpu.memory_space<vmem>>, vector<12x1xf32>
    %57 = vector.broadcast %56 : vector<12x1xf32> to vector<12x128xf32>
    %58 = arith.addf %55, %57 : vector<12x128xf32>
    %59 = arith.maximumf %1, %3 : vector<4x128xf32>
    %60 = arith.maximumf %5, %7 : vector<4x128xf32>
    %61 = arith.maximumf %59, %60 : vector<4x128xf32>
    %c0_42 = arith.constant 0 : index
    %62 = memref.load %arg6[%c0_42] : memref<1xf32, #tpu.memory_space<smem>>
    %cst_43 = arith.constant 0.000000e+00 : f32
    %63 = vector.broadcast %cst_43 : f32 to vector<12x128xf32>
    %64 = arith.cmpf ogt, %58, %63 : vector<12x128xf32>
    %65 = vector.broadcast %62 : f32 to vector<12x128xf32>
    %66 = arith.mulf %65, %58 : vector<12x128xf32>
    %67 = arith.select %64, %58, %66 : vector<12x128xi1>, vector<12x128xf32>
    %c0_44 = arith.constant 0 : index
    %c0_45 = arith.constant 0 : index
    %c0_46 = arith.constant 0 : index
    %68 = vector.load %arg7[%c0_44, %c0_45, %c0_46] : memref<1x16x128xf32, #tpu.memory_space<vmem>>, vector<1x12x128xf32>
    %69 = vector.shape_cast %68 : vector<1x12x128xf32> to vector<12x128xf32>
    %70 = vector.shape_cast %67 : vector<12x128xf32> to vector<1x12x128xf32>
    tpu.vector_store %arg7[%c0_44, %c0_45, %c0_46], %70 {strides = array<i32>} : memref<1x16x128xf32, #tpu.memory_space<vmem>>, vector<1x12x128xf32>,
    %cst_47 = arith.constant 0.000000e+00 : f32
    %71 = vector.broadcast %cst_47 : f32 to vector<4x128xf32>
    %72 = arith.cmpf ogt, %61, %71 : vector<4x128xf32>
    %73 = vector.broadcast %62 : f32 to vector<4x128xf32>
    %74 = arith.mulf %73, %61 : vector<4x128xf32>
    %75 = arith.select %72, %61, %74 : vector<4x128xi1>, vector<4x128xf32>
    %c0_48 = arith.constant 0 : index
    %c12 = arith.constant 12 : index
    %c0_49 = arith.constant 0 : index
    %76 = vector.load %arg7[%c0_48, %c12, %c0_49] : memref<1x16x128xf32, #tpu.memory_space<vmem>>, vector<1x4x128xf32>
    %77 = vector.shape_cast %76 : vector<1x4x128xf32> to vector<4x128xf32>
    %78 = vector.shape_cast %75 : vector<4x128xf32> to vector<1x4x128xf32>
    tpu.vector_store %arg7[%c0_48, %c12, %c0_49], %78 {strides = array<i32>} : memref<1x16x128xf32, #tpu.memory_space<vmem>>, vector<1x4x128xf32>,
    return
  }
  func.func @transform_0(%arg0: i32, %arg1: i32) -> (i32, i32, i32, i32, i32) {
    %c0_i32 = arith.constant 0 : i32
    %c0_i32_0 = arith.constant 0 : i32
    %c0_i32_1 = arith.constant 0 : i32
    %c0_i32_2 = arith.constant 0 : i32
    return %arg0, %c0_i32, %c0_i32_0, %c0_i32_1, %arg1 : i32, i32, i32, i32, i32
  }
  func.func @transform_1(%arg0: i32, %arg1: i32) -> (i32, i32, i32, i32, i32) {
    %c1_i32 = arith.constant 1 : i32
    %0 = arith.muli %arg1, %c1_i32 : i32
    %c1_i32_0 = arith.constant 1 : i32
    %1 = arith.subi %0, %c1_i32_0 : i32
    %c0_i32 = arith.constant 0 : i32
    %2 = arith.maxsi %1, %c0_i32 : i32
    %c1_i32_1 = arith.constant 1 : i32
    %c0_i32_2 = arith.constant 0 : i32
    %c0_i32_3 = arith.constant 0 : i32
    %c0_i32_4 = arith.constant 0 : i32
    return %arg0, %c1_i32_1, %c0_i32_2, %c0_i32_3, %2 : i32, i32, i32, i32, i32
  }
  func.func @transform_2(%arg0: i32, %arg1: i32) -> (i32, i32) {
    %c0_i32 = arith.constant 0 : i32
    %c0_i32_0 = arith.constant 0 : i32
    %c0_i32_1 = arith.constant 0 : i32
    return %c0_i32, %c0_i32_0 : i32, i32
  }
  func.func @transform_3(%arg0: i32, %arg1: i32) -> (i32, i32) {
    %c0_i32 = arith.constant 0 : i32
    %c0_i32_0 = arith.constant 0 : i32
    %c0_i32_1 = arith.constant 0 : i32
    return %c0_i32, %c0_i32_0 : i32, i32
  }
  func.func @transform_4(%arg0: i32, %arg1: i32) -> i32 {
    %c0_i32 = arith.constant 0 : i32
    %c0_i32_0 = arith.constant 0 : i32
    return %c0_i32 : i32
  }
  func.func @transform_5(%arg0: i32, %arg1: i32) -> (i32, i32, i32) {
    %c0_i32 = arith.constant 0 : i32
    %c0_i32_0 = arith.constant 0 : i32
    return %arg0, %c0_i32, %arg1 : i32, i32, i32
  }
}

</mosaic_0001>

<bundles_post_ra>
// kernel: tpu_custom_call.1
= control target key start
LH: loop header
LB: loop body
LE: loop exit
PB: predicated region body
PF: predicated region fallthrough
CT: control target
= control target key end

     0   :  { %s1429_s0 = inlined_call_operand.hbm [shape: f32[2,2,2,4,256], index: 0, kind: input, shape index: {}]   ;;  %s1430_s1 = inlined_call_operand.hbm [shape: f32[2,2,2,4,256], index: 1, kind: input, shape index: {}]   ;;  %s1431_s2 = inlined_call_operand.vmem [shape: f32[12,36], index: 2, kind: input, shape index: {}]   ;;  %s1432_s3 = inlined_call_operand.vmem [shape: f32[12,1], index: 3, kind: input, shape index: {}]   ;;  %s1433_s4 = inlined_call_operand.<no memory space> [shape: f32[1], index: 4, kind: input, shape index: {}]   ;;  %s1434_s5 = inlined_call_operand.hbm [shape: f32[2,16,256], index: 5, kind: output, shape index: {}]  }
   0x1   :  { %1447 = sst [smem:[#allocation15_spill]] %s1429_s0 }
   0x2   :  { %1448 = sst [smem:[#allocation16_spill]] %s1434_s5 }
   0x3   :  { %10 = sst [smem:[#allocation2]] %s1433_s4 }
   0x4   :  { %11 = vsyncpa [#allocation4], 0 }
   0x5   :  { %13 = vsyncpa [#allocation4 + $0x1], 0 }
   0x6   :  { %14 = vsyncpa [#allocation7], 0 }
   0x7   :  { %16 = vsyncpa [#allocation7 + $0x1], 0 }
   0x8   :  { %17 = vsyncpa [#allocation5], 0 }
   0x9   :  { %19 = vsyncpa [#allocation5 + $0x1], 0  ;;  %s1064_s20 = smov 0   ;;  %s1066_s21 = smov 0  }
   0xa   :  { %s1068_s22 = smov 0   ;;  %s1070_s23 = smov 0  }
   0xb   :  { %s1072_s24 = smov 0   ;;  %s1074_s25 = smov 0  }
   0xc   :  { %s1076_s26 = smov 0   ;;  %s1078_s4 = smov 0  }
   0xd   :  { %s1080_s27 = smov 0   ;;  %s1082_s28 = smov 0  }
   0xe   :  { %s1084_s29 = smov 0  }
   0xf LB: > { %1449 = sst [smem:[#allocation12_spill]] %s989_s23  ;;  %s644_s30 = sadd.s32 4294967295, %s1017_s29   ;;  %s1017_s29 = sphi %s1084_s29, %s25_s29   ;;  %s1013_s28 = sphi %s1082_s28, %s1488_s28   ;;  %s1009_s27 = sphi %s1080_s27, %s1487_s27   ;;  %s1005_s4 = sphi %s1078_s4, %s1486_s4   ;;  %s1001_s26 = sphi %s1076_s26, %s1485_s26   ;;  %s997_s25 = sphi %s1074_s25, %s1484_s25   ;;  %s993_s24 = sphi %s1072_s24, %s1483_s24   ;;  %s989_s23 = sphi %s1070_s23, %s1482_s23   ;;  %s985_s22 = sphi %s1068_s22, %s1481_s22   ;;  %s981_s21 = sphi %s1066_s21, %s1480_s21   ;;  %s977_s20 = sphi %s1064_s20, %s1479_s20  }
  0x10   : > { %s645_s6 = sadd.s32 4294967294, %s1017_s29   ;;  %s34_s7 = sadd.s32 1, %s1009_s27 }
  0x11   : > { %s37_s8 = sadd.s32 1, %s1013_s28  ;;  %p35_p0 = scmp.ge.s32.totalorder %s34_s7, 2 }
  0x12   : > { %p53_p1 = scmp.ne.s32.totalorder %s997_s25, %s993_s24  ;;  %p1439_p2 = scmp.eq.s32.totalorder %s1017_s29, 0 }
  0x13   : > { %s1490_s7 = smov (%p35_p0, %s34_s7), 0  ;;  %s1492_s8 = smov (!%p35_p0, %s37_s8), %s1013_s28 }
  0x14   : > { %p1136_p3 = por %p1439_p2, %p53_p1  ;;  %p59_p4 = scmp.ne.s32.totalorder %s993_s24, %s989_s23 }
  0x15   : > { %p1142_p5 = scmp.eq.s32.totalorder %s644_s30, 0  ;;  %p182_p6 = scmp.eq.s32.totalorder %s644_s30, 3 }
  0x16   : > { %p188_p7 = scmp.eq.s32.totalorder %s645_s6, 3  ;;  %p1438_p11 = scmp.lt.s32.totalorder %s1017_s29, 4 }
  0x17   : > { %p1148_p8 = por %p1142_p5, %p59_p4  ;;  %p1152_p9 = por %p182_p6, %p53_p1 }
  0x18   : > { %p1156_p10 = por %p188_p7, %p59_p4  ;;  %s217_s16 = sand.u32 1, %s997_s25  }
  0x19   : > { %s1452_s13 = scalar_select %p1148_p8, 1, 0 }
  0x1a   : > { %s1453_s14 = scalar_select %p1152_p9, 1, 0 }
  0x1b   : > { %s1454_s15 = scalar_select %p1156_p10, 1, 0 }
  0x1c   : > { %s650_s17 = sshll.u32 %s217_s16, 4  ;;  %s651_s18 = sshll.u32 %s1013_s28, 3 }
  0x1d   : > { %1455 = sst [smem:[#allocation13_spill]] %s1454_s15  ;;  %s226_s19 = sadd.s32 %s1009_s27, %s651_s18 }
  0x1e   : > { %s221_s30 = scalar_lea.vmem [#allocation3], %s650_s17  ;;  %s652_s9 = sshll.u32 %s226_s19, 6 }
  0x1f   : > { %s229_s6 = sshll.u32 %s221_s30, 4  ;;  %s1456_s0 = sld [smem:[#allocation15_spill]]  ;;  %s1164_s6 = int_to_ptr.vmem [resolvable:$true] %s229_s6 }
  0x20   : > { %p1175_p12 = pnand %p1438_p11, %p1136_p3  ;;  %s1179_s17 = scalar_lea.sflag [#allocation4], %s217_s16 }
  0x22   : > { %p831_p0 = pneg %p1175_p12 }
  0x25   : > { %s1169_s5 = scalar_lea.hbm %s1456_s0, %s652_s9  ;;  %s834_s10 = scalar_lea.hbm %s1456_s0, 1024 }
  0x26   : > { %s829_s18 = scalar_lea.hbm %s1169_s5, 256  ;;  %p835_p3 = scmp.lt.u32.totalorder %s1169_s5, %s1456_s0 }
  0x27   : > { %p830_p13 = scmp.ne.s32.totalorder %s1169_s5, %s829_s18  ;;  %p836_p6 = scmp.lt.u32.totalorder %s834_s10, %s829_s18 }
  0x28   : > { %p838_p11 = scmp.lt.u32.totalorder %s829_s18, %s1169_s5 }
  0x29   : > { %p832_p1 = pnand %p831_p0, %p830_p13  ;;  %p837_p7 = por %p836_p6, %p835_p3 }
  0x2b   : > { %p833_p4 = pneg %p832_p1  ;;  %p839_p2 = por %p838_p11, %p837_p7 }
  0x2d   : > { %p840_p10 = pnand %p839_p2, %p833_p4 }
  0x2f   : > { %843 = shalt.err (!%p840_p10)
}
  0x30   : > { %s844_s16 = scalar_lea.vmem %s1164_s6, 256  ;;  %s1019_s30 = smov [#allocation3]  }
  0x31   : > { %p845_p13 = scmp.ne.s32.totalorder %s1164_s6, %s844_s16  ;;  %s849_s23 = sshll.u32 %s1019_s30, 4  ;;  %s850_s23 = int_to_ptr.vmem [resolvable:$false] %s849_s23 }
  0x32   : > { %s851_s9 = scalar_lea.vmem %s850_s23, 512  ;;  %p852_p8 = scmp.lt.s32.totalorder %s1164_s6, %s850_s23 }
  0x33   : > { %p847_p1 = pnand %p845_p13, %p831_p0  ;;  %p853_p3 = scmp.lt.s32.totalorder %s851_s9, %s844_s16 }
  0x35   : > { %p848_p9 = pneg %p847_p1  ;;  %p854_p6 = por %p853_p3, %p852_p8 }
  0x37   : > { %p855_p11 = pnand %p854_p6, %p848_p9 }
  0x39   : > { %858 = shalt.err (!%p855_p11)
}
  0x3a   : > { %s1442_s18 = smov 128   ;;  %s1443_s10 = smov 64  }
  0x3b   : > { %s1444_s11 = smov 4   ;;  %p657_p2 = scmp.ge.s32.totalorder %s1017_s29, 1 }
  0x3c   : > { %710 = dma.hbm_to_vmem [thread:$0]  (!%p1175_p12), %s1169_s5, 256, %s1164_s6, %s1179_s17, %s1442_s18, %s1443_s10, %s1444_s11  }
  0x3d   : > { %p263_p8 = scmp.lt.s32.totalorder %s1017_s29, 5  ;;  %p39_p10 = scmp.ge.s32.totalorder %s1492_s8, 2 }
  0x3e   : > { %s80_s30 = sadd.s32 1, %s985_s22  ;;  %s1460_s15 = ssub.s32 %s1009_s27, %s1490_s7 }
  0x3f   : > { %p1212_p9 = pnand %p657_p2, %p263_p8  ;;  %s1494_s8 = smov (%p39_p10, %s1492_s8), 0 }
  0x40   : > { %1459 = sst [smem:[#allocation14_spill]] %s1494_s8  ;;  %s41_s16 = ssub.s32 %s1013_s28, %s1494_s8 }
  0x41   : > { %s43_s23 = sor.u32 %s1460_s15, %s41_s16  ;;  %p87_p0 = scmp.ne.s32.totalorder %s985_s22, %s981_s21 }
  0x42   : > { %p44_p4 = scmp.eq.s32.totalorder %s43_s23, 0  ;;  %p93_p12 = scmp.ne.s32.totalorder %s981_s21, %s977_s20 }
  0x43   : > { %s1461_s5 = sadd.s32 1, %s997_s25  ;;  %p1462_p7 = scmp.eq.s32.totalorder %s1017_s29, 0 }
  0x44   : > { %s1233_s6 = scalar_select %p44_p4, %s997_s25, %s1461_s5  }
  0x45   : > { %p89_p13 = por %p87_p0, %p1462_p7  ;;  %p1239_p1 = por %p93_p12, %p1142_p5 }
  0x46   : > { %s239_s9 = sand.u32 1, %s985_s22   ;;  %p78_p3 = scmp.eq.s32.totalorder %s41_s16, 0 }
  0x47   : > { %s1463_s17 = scalar_select %p1239_p1, 1, 0 }
  0x48   : > { %s653_s18 = sshll.u32 %s239_s9, 3  ;;  %s974_s15 = sshll.u32 %s1013_s28, 9 }
  0x49   : > { %s1245_s10 = scalar_select %p78_p3, %s985_s22, %s80_s30  }
  0x4a   : > { %s243_s11 = scalar_lea.vmem [#allocation6], %s653_s18  ;;  %s573_s5 = scalar_lea.hbm %s1430_s1, %s974_s15 }
  0x4b   : > { %s255_s0 = sshll.u32 %s243_s11, 4  ;;  %s1253_s8 = scalar_lea.hbm %s573_s5, 256  ;;  %s1251_s0 = int_to_ptr.vmem [resolvable:$true] %s255_s0 }
  0x4c   : > { %p1464_p5 = scmp.lt.s32.totalorder %s1017_s29, 4  ;;  %s1261_s18 = scalar_lea.sflag [#allocation7], %s239_s9 }
  0x4d   : > { %s889_s11 = scalar_lea.hbm %s573_s5, 384  ;;  %s864_s15 = scalar_lea.hbm %s1430_s1, 1024 }
  0x4e   : > { %p1257_p6 = pnand %p1464_p5, %p89_p13  ;;  %p860_p11 = scmp.ne.s32.totalorder %s1253_s8, %s889_s11 }
  0x4f   : > { %p865_p0 = scmp.lt.u32.totalorder %s1253_s8, %s1430_s1  ;;  %p866_p4 = scmp.lt.u32.totalorder %s864_s15, %s889_s11 }
  0x50   : > { %p861_p2 = pneg %p1257_p6  ;;  %p868_p7 = scmp.lt.u32.totalorder %s889_s11, %s1253_s8 }
  0x51   : > { %p867_p12 = por %p866_p4, %p865_p0 }
  0x52   : > { %p862_p8 = pnand %p861_p2, %p860_p11 }
  0x53   : > { %p869_p13 = por %p868_p7, %p867_p12 }
  0x54   : > { %p863_p10 = pneg %p862_p8 }
  0x56   : > { %p870_p3 = pnand %p869_p13, %p863_p10 }
  0x58   : > { %873 = shalt.err (!%p870_p3)
}
  0x59   : > { %s874_s9 = scalar_lea.vmem %s1251_s0, 128  ;;  %s1023_s5 = smov [#allocation6]  }
  0x5a   : > { %p875_p5 = scmp.ne.s32.totalorder %s1251_s0, %s874_s9  ;;  %s879_s16 = sshll.u32 %s1023_s5, 4  ;;  %s880_s16 = int_to_ptr.vmem [resolvable:$false] %s879_s16 }
  0x5b   : > { %s881_s30 = scalar_lea.vmem %s880_s16, 256  ;;  %p882_p1 = scmp.lt.s32.totalorder %s1251_s0, %s880_s16 }
  0x5c   : > { %p877_p11 = pnand %p875_p5, %p861_p2  ;;  %p883_p0 = scmp.lt.s32.totalorder %s881_s30, %s874_s9 }
  0x5e   : > { %p878_p8 = pneg %p877_p11  ;;  %p884_p4 = por %p883_p0, %p882_p1 }
  0x60   : > { %p885_p12 = pnand %p884_p4, %p878_p8 }
  0x62   : > { %888 = shalt.err (!%p885_p12)
}
  0x63   : > { %s1466_s11 = smov 4   ;;  %s1467_s15 = smov 64  }
  0x64   : > { %s1468_s23 = smov 128   ;;  %267 = sbr.rel (%p1212_p9) target bundleno = 603 (0x25b), region = 40 }
  0x65   : > { %713 = dma.hbm_to_vmem [thread:$0]  (!%p1257_p6), %s1253_s8, 128, %s1251_s0, %s1261_s18, %s1468_s23, %s1467_s15, %s1466_s11  }
  0x66   : > { %s1294_s20 = sand.u32 (!%p1212_p9), 1, %s993_s24   ;;  %p1469_p1 = scmp.ne.s32.totalorder (!%p1212_p9), %s1452_s13, 0 }
  0x67   : > { %s658_s9 = sshll.u32 (!%p1212_p9), %s1294_s20, 4  ;;  %s270_s5 = scalar_lea.sflag (!%p1212_p9), [#allocation4], %s1294_s20 }
  0x68   : > { %s273_s12 = scalar_lea.vmem (!%p1212_p9), [#allocation3], %s658_s9 }
  0x6b   : > { %963 = dma.done.wait (%p1469_p1), %s270_s5, 256  }
  0x6c   : > { %965 = vsyncadd (%p1469_p1), %s270_s5, 4294967040  ;;  %s278_s0 = sand.u32 1, %s981_s21   ;;  %p1470_p9 = scmp.ne.s32.totalorder %s1463_s17, 0 }
  0x6d   : > { %s659_s8 = sshll.u32 %s278_s0, 3  ;;  %s279_s19 = scalar_lea.sflag [#allocation7], %s278_s0 }
  0x6e   : > { %s282_s18 = scalar_lea.vmem [#allocation6], %s659_s8 }
  0x6f   : > { %967 = dma.done.wait (%p1470_p9), %s279_s19, 128  }
  0x70   : > { %969 = vsyncadd (%p1470_p9), %s279_s19, 4294967168  ;;  %p324_p6 = scmp.gt.s32.totalorder %s1001_s26, 0  ;;  %v1310_v1 = vld [vmem:[%s273_s12 + $0xc] sm:$0xf]  ;;  %v664_v2 = vld [vmem:[%s282_s18 + $0x4] sm:$0xf]  ;;  %v333_v14 = vlaneseq }
  0x71   : > { %v661_v3 = vld [vmem:[%s273_s12 + $0x4] sm:$0xf]  ;;  %v317_v5 = vld [vmem:[%s273_s12] sm:$0xf]  ;;  %v662_v6 = vld [vmem:[%s273_s12 + $0x8] sm:$0xf] }
  0x72   : > { %s326_s16 = scalar_select %p324_p6, 1, 0  ;;  %v498_v8 = vmax.f32 %v317_v5, %v661_v3  ;;  %v325_v9 = vld [vmem:[%s282_s18] sm:$0xf]  ;;  %v499_v10 = vmax.f32 %v662_v6, %v1310_v1  ;;  %vm356_vm1 = vcmask 130048   ;;  %v334_v18 = vand.u32 127, %v333_v14 }
  0x73   : > { %s1024_s13 = smov 16   ;;  %s1025_s17 = smov 1   ;;  %v400_v21 = vld [vmem:[%s1431_s2] sm:$0xff]  ;;  %vm414_vm2 = vcmask 293888   ;;  %v391_v22 = vrot.slane %v661_v3, 4  ;;  %v393_v26 = vrot.slane %v662_v6, 4 }
  0x74   : > { %v327_v0 = vstv %s326_s16  ;;  %v1314_v13 = vmax.f32 %v498_v8, %v499_v10  ;;  %v339_v23 = vand.u32 15, %v334_v18  ;;  %690 = vmatprep.mubr.msk.f32.mxu0 %vm414_vm2, %v400_v21  ;;  %v403_v24 = vld [vmem:[%s1432_s3 + $0x8] sm:$0xf]  ;;  %v402_v25 = vld [vmem:[%s1432_s3] sm:$0xff]  ;;  %v1026_v27 = vmov 0   ;;  %s501_s19 = sld [smem:[#allocation2]] }
  0x75   : > { %vm328_vm0 = vcmp.eq.s32.totalorder %v327_v0, 1  ;;  %828 = vset.pattern.permute.xlu0 %v1026_v27  ;;  %827 = vset.pattern.permute.xlu1 %v1026_v27  ;;  %vm371_vm3 = vcmask 7168   ;;  %vm395_vm4 = vcmask 1043456   ;;  %v401_v49 = vld [vmem:[%s1431_s2 + $0x8] sm:$0xf]  ;;  %s313_s18 = scalar_lea.vmem [#allocation8], %s658_s9 }
  0x76   : > { %v332_v4 = vsel %vm328_vm0, %v664_v2, 0.0  ;;  %v329_v11 = vsel %vm328_vm0, %v325_v9, 0.0  ;;  %vm1328_vm5 = vcmp.eq.s32.totalorder %v339_v23, 0  ;;  %v398_v31 = vsel %vm395_vm4, %v317_v5, %v391_v22  ;;  %s669_s16 = sshll.u32 %s1005_s4, 2  ;;  %s1473_s9 = sld [smem:[#allocation16_spill]] }
  0x77   : > { %v817_v7 = vpack.i.bf16 %v1310_v1, %v332_v4  ;;  %v822_v12 = vpack.i.bf16 %v662_v6, %v329_v11  ;;  %vm511_vm6 = vcmp.gt.f32.partialorder %v1314_v13, 0.0  ;;  %s516_s15 = scalar_lea.sflag [#allocation5], %s1294_s20  ;;  %p1474_p10 = scmp.ne.s32.totalorder %s1453_s14, 0 }
  0x78   : > { %s1027_s5 = smov [#allocation8]  }
  0x79   : > { %818 = vrot.lane.b32.xlu0 %v817_v7, %s1024_s13  ;;  %823 = vrot.lane.b32.xlu1 %v822_v12, %s1024_s13  ;;  %s527_s13 = sadd.s32 %s1001_s26, %s669_s16  ;;  %s894_s12 = sshll.u32 %s1027_s5, 4  ;;  %s895_s12 = int_to_ptr.vmem [resolvable:$false] %s894_s12 }
  0x7a   : > { %v504_v50 = vstv %s501_s19  ;;  %s670_s30 = sshll.u32 %s527_s13, 7  ;;  %s896_s0 = scalar_lea.vmem %s895_s12, 512 }
  0x7b   : > { %v512_v51 = vmul.f32 %v504_v50, %v1314_v13 }
  0x7c   : > { %s1366_s11 = scalar_lea.hbm %s1473_s9, %s670_s30 }
  0x7d   : > { %375 = vrot.lane.b32.xlu0 %v661_v3, %s1025_s17  ;;  %v513_v52 = vsel %vm511_vm6, %v1314_v13, %v512_v51 }
  0x7e   : > { %514 = vst [vmem:[%s313_s18 + $0xc] sm:$0xf] %v513_v52 }
  0x81   : > { %380 = vrot.lane.b32.xlu0 %v1310_v1, %s1025_s17 }
  0x85   : > { %411 = vperm.xlu0 %828, %v403_v24  }
  0xeb   : > { %v819_v15 = vpop.permute.xlu0 %818  ;;  %v824_v35 = vpop.permute.xlu1 %823 }
  0xec   : > { %v821_v16 = vunpack.i.h.bf16 %v819_v15  ;;  %v820_v17 = vunpack.i.l.bf16 %v819_v15  ;;  %v826_v36 = vunpack.i.h.bf16 %v824_v35  ;;  %v825_v37 = vunpack.i.l.bf16 %v824_v35 }
  0xee   : > { %v366_v19 = vsel %vm356_vm1, %v820_v17, %v821_v16  ;;  %v357_v40 = vsel %vm356_vm1, %v825_v37, %v826_v36 }
  0xef   : > { %368 = vrot.lane.b32.xlu1 %v366_v19, %s1025_s17  ;;  %v376_v20 = vpop.permute.xlu0 %375  ;;  %v386_v42 = vrot.slane %v357_v40, 4  ;;  %s530_s17 = sshll.u32 %s313_s18, 4  ;;  %s1361_s17 = int_to_ptr.vmem [resolvable:$true] %s530_s17 }
  0xf0   : > { %v378_v38 = vsel %vm371_vm3, 0.0, %v376_v20  ;;  %s890_s23 = scalar_lea.vmem %s1361_s17, 256  ;;  %p897_p3 = scmp.lt.s32.totalorder %s1361_s17, %s895_s12 }
  0xf1   : > { %v379_v39 = vsel %vm1328_vm5, 0.0, %v378_v38  ;;  %p891_p2 = scmp.ne.s32.totalorder %s1361_s17, %s890_s23  ;;  %p898_p5 = scmp.lt.s32.totalorder %s896_s0, %s890_s23 }
  0xf2   : > { %v389_v41 = vrot.slane %v379_v39, 4 }
  0xf3   : > { %v381_v28 = vpop.permute.xlu0 %380  ;;  %406 = vperm.xlu1 %827, %v402_v25   ;;  %p892_p7 = pnand %p891_p2, %p1474_p10  ;;  %p899_p11 = por %p898_p5, %p897_p3 }
  0xf4   : > { %v383_v30 = vsel %vm371_vm3, 0.0, %v381_v28  ;;  %v397_v47 = vsel %vm395_vm4, %v366_v19, %v389_v41 }
  0xf5   : > { %v384_v32 = vsel %vm1328_vm5, 0.0, %v383_v30  ;;  %p893_p13 = pneg %p892_p7 }
  0xf6   : > { %v399_v33 = vsel %vm395_vm4, %v384_v32, %v393_v26 }
  0xf7   : > { %v697_v34 = vpack.c.bf16 %v399_v33, %v398_v31  ;;  %p900_p8 = pnand %p899_p11, %p893_p13 }
 0x104   : > { %v412_v53 = vpop.permute.xlu0 %411 }
 0x161   : > { %v369_v43 = vpop.permute.xlu1 %368 }
 0x162   : > { %v372_v44 = vsel %vm371_vm3, 0.0, %v369_v43 }
 0x163   : > { %v373_v45 = vsel %vm1328_vm5, 0.0, %v372_v44 }
 0x164   : > { %v396_v46 = vsel %vm395_vm4, %v373_v45, %v386_v42 }
 0x165   : > { %v693_v48 = vpack.c.bf16 %v397_v47, %v396_v46 }
 0x167   : > { %694 = vmatprep.subr.bf16.mxu0 %v693_v48 }
 0x168   : > { %696 = vmatpush3.bf16.msra.mxu0 %v693_v48 }
 0x169   : > { %698 = vmatprep.subr.bf16.mxu0 %v697_v34 }
 0x16c   : > { %700 = vmatpush3.bf16.msra.mxu0 %v697_v34 }
 0x16d   : > { %688 = vmatprep.subr.msk.mxu0 %vm395_vm4, %v1310_v1 }
 0x170   : > { %689 = vmatpush3.msk.msra.mxu0 %vm395_vm4, %v1310_v1 }
 0x171   : > { %691 = vmatmul.mubr.msk.f32.vlgmr.msra.gmra.mrb[0].mxu0 %vm414_vm2, %v401_v49 }
 0x172   : > { %v407_v54 = vpop.permute.xlu1 %406 }
 0x244   : > { %v692_v55 = vpop.f32.mrb[0].mxu0 }
 0x245   : > { %v495_v56 = vadd.f32 %v692_v55, %v412_v53  ;;  %v489_v57 = vpop.f32.mrb[1].mxu0 }
 0x246   : > { %v490_v58 = vadd.f32 %v489_v57, %v407_v54 }
 0x247   : > { %vm503_vm7 = vcmp.gt.f32.partialorder %v495_v56, 0.0  ;;  %v506_v59 = vmul.f32 %v504_v50, %v495_v56 }
 0x248   : > { %vm502_vm8 = vcmp.gt.f32.partialorder %v490_v58, 0.0  ;;  %v505_v60 = vmul.f32 %v504_v50, %v490_v58 }
 0x249   : > { %v508_v61 = vsel %vm503_vm7, %v495_v56, %v506_v59 }
 0x24a   : > { %510 = vst [vmem:[%s313_s18 + $0x8] sm:$0xf] %v508_v61  ;;  %v507_v62 = vsel %vm502_vm8, %v490_v58, %v505_v60 }
 0x24b   : > { %509 = vst [vmem:[%s313_s18] sm:$0xff] %v507_v62 }
 0x24c   : > { %903 = shalt.err (!%p900_p8)
}
 0x24d   : > { %s904_s8 = scalar_lea.hbm %s1366_s11, 256  ;;  %s908_s16 = scalar_lea.hbm %s1473_s9, 1024 }
 0x24e   : > { %p905_p0 = scmp.ne.s32.totalorder %s1366_s11, %s904_s8  ;;  %p909_p1 = scmp.lt.u32.totalorder %s1366_s11, %s1473_s9 }
 0x24f   : > { %p910_p9 = scmp.lt.u32.totalorder %s908_s16, %s904_s8  ;;  %p912_p2 = scmp.lt.u32.totalorder %s904_s8, %s1366_s11 }
 0x250   : > { %p906_p4 = pnand %p905_p0, %p1474_p10 }
 0x251   : > { %p911_p6 = por %p910_p9, %p909_p1 }
 0x252   : > { %p907_p12 = pneg %p906_p4 }
 0x253   : > { %p913_p7 = por %p912_p2, %p911_p6 }
 0x255   : > { %p914_p13 = pnand %p913_p7, %p907_p12 }
 0x257   : > { %917 = shalt.err (!%p914_p13)
}
 0x258   : > { %s1028_s4 = smov 128   ;;  %s1029_s26 = smov 256  }
 0x259   : > { %s1030_s23 = smov 8  }
 0x25a   : > { %705 = dma.vmem_to_hbm [thread:$0]  (%p1474_p10), %s1361_s17, 256, %s1366_s11, %s516_s15, %s1028_s4, %s1029_s26, %s1030_s23  }
 0x25b PF: > { %s1475_s5 = sld [smem:[#allocation12_spill]]  ;;  %s1476_s12 = sld [smem:[#allocation13_spill]] }
 0x25c   : > { %p719_p3 = scmp.ge.s32.totalorder %s1017_s29, 2 }
 0x261   : > { %s545_s0 = sand.u32 1, %s1475_s5   ;;  %p1477_p5 = scmp.ne.s32.totalorder %s1476_s12, 0 }
 0x262   : > { %s546_s8 = scalar_lea.sflag [#allocation5], %s545_s0 }
 0x263   : > { %p715_p11 = pnand %p719_p3, %p1477_p5 }
 0x265   : > { %971 = dma.done.wait (!%p715_p11), %s546_s8, 256  }
 0x266   : > { %973 = vsyncadd (!%p715_p11), %s546_s8, 4294967040  ;;  %s25_s29 = sadd.s32 1, %s1017_s29   ;;  %s1478_s14 = sld [smem:[#allocation14_spill]] }
 0x267   : > { %p22_p8 = scmp.ge.s32.totalorder %s25_s29, 6   ;;  %s1479_s20 = smov %s981_s21 }
 0x268   : > { %s1480_s21 = smov %s985_s22  ;;  %s1481_s22 = smov %s1245_s10 }
 0x269   : > { %s1482_s23 = smov %s993_s24  ;;  %s1483_s24 = smov %s997_s25 }
 0x26a   : > { %s1484_s25 = smov %s1233_s6  ;;  %s1485_s26 = smov %s1009_s27 }
 0x26b   : > { %s1486_s4 = smov %s1013_s28  ;;  %s1487_s27 = smov %s1490_s7 }
 0x26c   : > { %s1488_s28 = smov %s1478_s14  ;;  %24 = sbr.rel (!%p22_p8) target bundleno = 15 (0xf), region = 102 }
 0x273   :  { %551 = vsyncpa [#allocation4], 1 }
 0x274   :  { %553 = vsyncpa [#allocation4 + $0x1], 1 }
 0x275   :  { %554 = vsyncpa [#allocation7], 1 }
 0x276   :  { %556 = vsyncpa [#allocation7 + $0x1], 1 }
 0x277   :  { %557 = vsyncpa [#allocation5], 1 }
 0x278   :  { %559 = vsyncpa [#allocation5 + $0x1], 1 }

</bundles_post_ra>
